<compile_context>
chip_gen: v5e
topology: v5e:2x2
jax: 0.10.0
libtpu: 0.0.40
codegen_flags: <defaults>
</compile_context>

<pallas_src>
import functools
import math

import jax
import jax.numpy as jnp
from jax.experimental import pallas as pl
from jax.experimental.pallas import tpu as pltpu

LANE = 128      # TPU lane width (last dim)
SUBLANE = 8     # TPU sublane width (second-to-last dim)


def _round_up(n, m):
    return ((n + m - 1) // m) * m


# ---------------------------------------------------------------------------
# Fused kernel: x -> [Linear+ReLU]*n_hidden -> Linear(head)
# refs = (x, w0, b0, w1, b1, ..., w_head, b_head, out)
#   x:  (tile_b, d_in_p)         lane-dense, zero-padded
#   wi: (d_prev_p, d_next_p)     pre-transposed, zero-padded
#   bi: (1, d_next_p)            zero-padded
# ---------------------------------------------------------------------------
def _fused_mlp_kernel(*refs, n_hidden):
    x_ref = refs[0]
    o_ref = refs[-1]
    h = x_ref[...].astype(jnp.float32)
    for i in range(n_hidden + 1):
        w = refs[1 + 2 * i][...]
        b = refs[2 + 2 * i][...]
        h = jnp.dot(h, w, preferred_element_type=jnp.float32) + b
        if i < n_hidden:
            h = jnp.maximum(h, 0.0)
        # dropout(p=0.1, training=False) -> identity at inference
    o_ref[...] = h.astype(o_ref.dtype)


def prepare_padded_layers(params):
    """Pre-transpose PyTorch-style (d_out, d_in) weights to (d_in, d_out) and
    zero-pad every feature dim up to a multiple of 128 (lane-dense). Done once;
    padded rows/cols are exactly zero so results are unchanged."""
    layers = list(params["layers"]) + [(params["head_w"], params["head_b"])]
    padded = []
    for (w, b) in layers:
        d_out, d_in = w.shape
        d_in_p = _round_up(d_in, LANE)
        d_out_p = _round_up(d_out, LANE)
        w_t = jnp.zeros((d_in_p, d_out_p), jnp.float32).at[:d_in, :d_out].set(w.T)
        b_p = jnp.zeros((1, d_out_p), jnp.float32).at[0, :d_out].set(b)
        padded.append((w_t, b_p))
    return padded


def fused_mlp(x, padded_layers, d_out):
    """y = head(relu(... relu(x @ W0 + b0) ...)), single pallas_call."""
    B, d_in = x.shape
    d_in_p = padded_layers[0][0].shape[0]
    d_out_p = padded_layers[-1][0].shape[1]
    n_hidden = len(padded_layers) - 1

    # Batch tiling: small batches -> one sublane-aligned tile; large batches ->
    # 512-row tiles pipelined over a 'parallel' grid axis (megacore sharding).
    tile_b = 512 if B >= 512 else _round_up(B, SUBLANE)
    B_p = _round_up(B, tile_b)

    # Lane-dense, zero-padded input block.
    x_p = jnp.zeros((B_p, d_in_p), x.dtype).at[:B, :d_in].set(x)

    flat_wb = [t for wb in padded_layers for t in wb]

    in_specs = [pl.BlockSpec((tile_b, d_in_p), lambda i: (i, 0))]
    for t in flat_wb:
        # Constant block index -> weights/biases stay resident in VMEM.
        in_specs.append(pl.BlockSpec(t.shape, lambda i: (0, 0)))

    out = pl.pallas_call(
        functools.partial(_fused_mlp_kernel, n_hidden=n_hidden),
        out_shape=jax.ShapeDtypeStruct((B_p, d_out_p), x.dtype),
        grid=(B_p // tile_b,),
        in_specs=in_specs,
        out_specs=pl.BlockSpec((tile_b, d_out_p), lambda i: (i, 0)),
        compiler_params=pltpu.CompilerParams(
            dimension_semantics=("parallel",),
            vmem_limit_bytes=32 * 1024 * 1024,  # safe on v7x's smaller VMEM
        ),
    )(x_p, *flat_wb)
    return out[:B, :d_out]


# ---------------------------------------------------------------------------
# Parameter init mirroring the PyTorch module's shapes (synthetic values)
# ---------------------------------------------------------------------------
def init_mlp_params(key, *, d_in, d_out, categories, d_layers, d_embedding):
    params = {}
    if categories is not None:
        offsets = jnp.asarray([0] + list(categories[:-1]), jnp.int32).cumsum()
        params["category_offsets"] = offsets
        key, sub = jax.random.split(key)
        bound = math.sqrt(1.0 / d_embedding)
        params["category_embeddings"] = jax.random.uniform(
            sub, (sum(categories), d_embedding), jnp.float32, -bound, bound
        )
        d_in = d_in + len(categories) * d_embedding

    layers = []
    prev = d_in
    for width in d_layers:
        key, kw, kb = jax.random.split(key, 3)
        bound = 1.0 / math.sqrt(prev)
        w = jax.random.uniform(kw, (width, prev), jnp.float32, -bound, bound)
        b = jax.random.uniform(kb, (width,), jnp.float32, -bound, bound)
        layers.append((w, b))
        prev = width
    params["layers"] = layers

    key, kw, kb = jax.random.split(key, 3)
    bound = 1.0 / math.sqrt(prev)
    params["head_w"] = jax.random.uniform(kw, (d_out, prev), jnp.float32, -bound, bound)
    params["head_b"] = jax.random.uniform(kb, (d_out,), jnp.float32, -bound, bound)
    return params


def mlp_forward(params, padded_layers, x_num, x_cat, *, d_out):
    if x_cat is not None:
        idx = x_cat + params["category_offsets"][None]                 # (B, n_cat)
        emb = jnp.take(params["category_embeddings"], idx, axis=0)     # (B, n_cat, d_emb)
        x = jnp.concatenate([x_num, emb.reshape(emb.shape[0], -1)], axis=-1)
    else:
        x = x_num
    return fused_mlp(x, padded_layers, d_out)


if __name__ == "__main__":
    # Small shapes consistent with the module:
    #   batch=8, d_in (numerical)=4, categories=[3,5], d_embedding=8,
    #   d_layers=[32,32], d_out=2  ->  effective d_in = 4 + 2*8 = 20
    B = 8
    d_num = 4
    categories = [3, 5]
    d_embedding = 8
    d_layers = [32, 32]
    d_out = 2

    key = jax.random.PRNGKey(0)
    key, kp, kx, kc = jax.random.split(key, 4)

    params = init_mlp_params(
        kp,
        d_in=d_num,
        d_out=d_out,
        categories=categories,
        d_layers=d_layers,
        d_embedding=d_embedding,
    )
    padded_layers = prepare_padded_layers(params)  # transpose + pad ONCE

    x_num = jax.random.normal(kx, (B, d_num), jnp.float32)
    x_cat = jnp.stack(
        [
            jax.random.randint(jax.random.fold_in(kc, i), (B,), 0, c)
            for i, c in enumerate(categories)
        ],
        axis=1,
    ).astype(jnp.int32)  # (B, n_cat), each column in [0, categories[i])

    fwd = jax.jit(functools.partial(mlp_forward, d_out=d_out))
    out = fwd(params, padded_layers, x_num, x_cat)
    out = jax.block_until_ready(out)

    # Sanity check against plain-JAX reference (same math, no Pallas).
    def ref_forward(p, xn, xc):
        idx = xc + p["category_offsets"][None]
        emb = jnp.take(p["category_embeddings"], idx, axis=0)
        x = jnp.concatenate([xn, emb.reshape(emb.shape[0], -1)], axis=-1)
        for (w, b) in p["layers"]:
            x = jnp.maximum(x @ w.T + b, 0.0)
        return x @ p["head_w"].T + p["head_b"]

    ref = ref_forward(params, x_num, x_cat)
    assert out.shape == (B, d_out)
    assert jnp.allclose(out, ref, atol=1e-5, rtol=1e-5)

    print("KERNEL_OK")
</pallas_src>

<mosaic_0001>
module attributes {stable_mosaic.version = 11 : i64} {
  func.func @_fused_mlp_kernel(%arg0: i32, %arg1: memref<8x128xf32, #tpu.memory_space<vmem>>, %arg2: memref<128x128xf32, #tpu.memory_space<vmem>>, %arg3: memref<1x128xf32, #tpu.memory_space<vmem>>, %arg4: memref<128x128xf32, #tpu.memory_space<vmem>>, %arg5: memref<1x128xf32, #tpu.memory_space<vmem>>, %arg6: memref<128x128xf32, #tpu.memory_space<vmem>>, %arg7: memref<1x128xf32, #tpu.memory_space<vmem>>, %arg8: memref<8x128xf32, #tpu.memory_space<vmem>>) attributes {dimension_semantics = [#tpu.dimension_semantics<parallel>], iteration_bounds = array<i64: 1>, scalar_prefetch = 0 : i64, scratch_operands = 0 : i64, tpu.core_type = #tpu.core_type<tc>, window_params = [{transform_indices = @transform_0, window_bounds = array<i64: 8, 128>}, {pipeline_mode = #tpu.pipeline_mode<synchronous>, transform_indices = @transform_1, window_bounds = array<i64: 128, 128>}, {pipeline_mode = #tpu.pipeline_mode<synchronous>, transform_indices = @transform_2, window_bounds = array<i64: 1, 128>}, {pipeline_mode = #tpu.pipeline_mode<synchronous>, transform_indices = @transform_3, window_bounds = array<i64: 128, 128>}, {pipeline_mode = #tpu.pipeline_mode<synchronous>, transform_indices = @transform_4, window_bounds = array<i64: 1, 128>}, {pipeline_mode = #tpu.pipeline_mode<synchronous>, transform_indices = @transform_5, window_bounds = array<i64: 128, 128>}, {pipeline_mode = #tpu.pipeline_mode<synchronous>, transform_indices = @transform_6, window_bounds = array<i64: 1, 128>}, {transform_indices = @transform_7, window_bounds = array<i64: 8, 128>}]} {
    %c0 = arith.constant 0 : index
    %c0_0 = arith.constant 0 : index
    %0 = vector.load %arg1[%c0, %c0_0] : memref<8x128xf32, #tpu.memory_space<vmem>>, vector<8x128xf32>
    %c0_1 = arith.constant 0 : index
    %c0_2 = arith.constant 0 : index
    %1 = vector.load %arg2[%c0_1, %c0_2] : memref<128x128xf32, #tpu.memory_space<vmem>>, vector<128x128xf32>
    %c0_3 = arith.constant 0 : index
    %c0_4 = arith.constant 0 : index
    %2 = vector.load %arg3[%c0_3, %c0_4] : memref<1x128xf32, #tpu.memory_space<vmem>>, vector<1x128xf32>
    %cst = arith.constant dense<0.000000e+00> : vector<8x128xf32>
    %3 = tpu.matmul %0, %1, %cst {dimension_numbers = #tpu.dot_dimension_numbers<[1], [0], [0], [1], [0, 0, 1, 1], [], []>} : vector<8x128xf32>, vector<128x128xf32>, vector<8x128xf32> -> vector<8x128xf32>
    %4 = vector.broadcast %2 : vector<1x128xf32> to vector<8x128xf32>
    %5 = arith.addf %3, %4 : vector<8x128xf32>
    %cst_5 = arith.constant 0.000000e+00 : f32
    %6 = vector.broadcast %cst_5 : f32 to vector<8x128xf32>
    %7 = arith.maximumf %5, %6 : vector<8x128xf32>
    %c0_6 = arith.constant 0 : index
    %c0_7 = arith.constant 0 : index
    %8 = vector.load %arg4[%c0_6, %c0_7] : memref<128x128xf32, #tpu.memory_space<vmem>>, vector<128x128xf32>
    %c0_8 = arith.constant 0 : index
    %c0_9 = arith.constant 0 : index
    %9 = vector.load %arg5[%c0_8, %c0_9] : memref<1x128xf32, #tpu.memory_space<vmem>>, vector<1x128xf32>
    %cst_10 = arith.constant dense<0.000000e+00> : vector<8x128xf32>
    %10 = tpu.matmul %7, %8, %cst_10 {dimension_numbers = #tpu.dot_dimension_numbers<[1], [0], [0], [1], [0, 0, 1, 1], [], []>} : vector<8x128xf32>, vector<128x128xf32>, vector<8x128xf32> -> vector<8x128xf32>
    %11 = vector.broadcast %9 : vector<1x128xf32> to vector<8x128xf32>
    %12 = arith.addf %10, %11 : vector<8x128xf32>
    %cst_11 = arith.constant 0.000000e+00 : f32
    %13 = vector.broadcast %cst_11 : f32 to vector<8x128xf32>
    %14 = arith.maximumf %12, %13 : vector<8x128xf32>
    %c0_12 = arith.constant 0 : index
    %c0_13 = arith.constant 0 : index
    %15 = vector.load %arg6[%c0_12, %c0_13] : memref<128x128xf32, #tpu.memory_space<vmem>>, vector<128x128xf32>
    %c0_14 = arith.constant 0 : index
    %c0_15 = arith.constant 0 : index
    %16 = vector.load %arg7[%c0_14, %c0_15] : memref<1x128xf32, #tpu.memory_space<vmem>>, vector<1x128xf32>
    %cst_16 = arith.constant dense<0.000000e+00> : vector<8x128xf32>
    %17 = tpu.matmul %14, %15, %cst_16 {dimension_numbers = #tpu.dot_dimension_numbers<[1], [0], [0], [1], [0, 0, 1, 1], [], []>} : vector<8x128xf32>, vector<128x128xf32>, vector<8x128xf32> -> vector<8x128xf32>
    %18 = vector.broadcast %16 : vector<1x128xf32> to vector<8x128xf32>
    %19 = arith.addf %17, %18 : vector<8x128xf32>
    %c0_17 = arith.constant 0 : index
    %c0_18 = arith.constant 0 : index
    %20 = vector.load %arg8[%c0_17, %c0_18] : memref<8x128xf32, #tpu.memory_space<vmem>>, vector<8x128xf32>
    tpu.vector_store %arg8[%c0_17, %c0_18], %19 {strides = array<i32>} : memref<8x128xf32, #tpu.memory_space<vmem>>, vector<8x128xf32>,
    return
  }
  func.func @transform_0(%arg0: i32) -> (i32, i32) {
    %c0_i32 = arith.constant 0 : i32
    %c0_i32_0 = arith.constant 0 : i32
    return %arg0, %c0_i32 : i32, i32
  }
  func.func @transform_1(%arg0: i32) -> (i32, i32) {
    %c0_i32 = arith.constant 0 : i32
    %c0_i32_0 = arith.constant 0 : i32
    %c0_i32_1 = arith.constant 0 : i32
    return %c0_i32, %c0_i32_0 : i32, i32
  }
  func.func @transform_2(%arg0: i32) -> (i32, i32) {
    %c0_i32 = arith.constant 0 : i32
    %c0_i32_0 = arith.constant 0 : i32
    %c0_i32_1 = arith.constant 0 : i32
    return %c0_i32, %c0_i32_0 : i32, i32
  }
  func.func @transform_3(%arg0: i32) -> (i32, i32) {
    %c0_i32 = arith.constant 0 : i32
    %c0_i32_0 = arith.constant 0 : i32
    %c0_i32_1 = arith.constant 0 : i32
    return %c0_i32, %c0_i32_0 : i32, i32
  }
  func.func @transform_4(%arg0: i32) -> (i32, i32) {
    %c0_i32 = arith.constant 0 : i32
    %c0_i32_0 = arith.constant 0 : i32
    %c0_i32_1 = arith.constant 0 : i32
    return %c0_i32, %c0_i32_0 : i32, i32
  }
  func.func @transform_5(%arg0: i32) -> (i32, i32) {
    %c0_i32 = arith.constant 0 : i32
    %c0_i32_0 = arith.constant 0 : i32
    %c0_i32_1 = arith.constant 0 : i32
    return %c0_i32, %c0_i32_0 : i32, i32
  }
  func.func @transform_6(%arg0: i32) -> (i32, i32) {
    %c0_i32 = arith.constant 0 : i32
    %c0_i32_0 = arith.constant 0 : i32
    %c0_i32_1 = arith.constant 0 : i32
    return %c0_i32, %c0_i32_0 : i32, i32
  }
  func.func @transform_7(%arg0: i32) -> (i32, i32) {
    %c0_i32 = arith.constant 0 : i32
    %c0_i32_0 = arith.constant 0 : i32
    return %arg0, %c0_i32 : i32, i32
  }
}

</mosaic_0001>

<bundles_post_ra>
// kernel: mlp_forward.1
= control target key start
LH: loop header
LB: loop body
LE: loop exit
PB: predicated region body
PF: predicated region fallthrough
CT: control target
= control target key end

     0   :  { %12 = vsyncpa [#allocation3], 0  ;;  %s360_s0 = inlined_call_operand.vmem [shape: f32[8,128], index: 0, kind: input, shape index: {}]   ;;  %s361_s1 = inlined_call_operand.vmem [shape: f32[128,128], index: 1, kind: input, shape index: {}]   ;;  %s362_s2 = inlined_call_operand.vmem [shape: f32[1,128], index: 2, kind: input, shape index: {}]   ;;  %s363_s3 = inlined_call_operand.hbm [shape: f32[128,128], index: 3, kind: input, shape index: {}]   ;;  %s364_s4 = inlined_call_operand.vmem [shape: f32[1,128], index: 4, kind: input, shape index: {}]   ;;  %s365_s5 = inlined_call_operand.hbm [shape: f32[128,128], index: 5, kind: input, shape index: {}]   ;;  %s366_s6 = inlined_call_operand.vmem [shape: f32[1,128], index: 6, kind: input, shape index: {}]   ;;  %s367_s7 = inlined_call_operand.vmem [shape: f32[8,128], index: 7, kind: output, shape index: {}]  }
   0x1   :  { %s24_s26 = sshll.u32 %s363_s3, 4  ;;  %s25_s26 = int_to_ptr.hbm [resolvable:$true] %s24_s26 }
   0x2   :  { %13 = vsyncpa [#allocation5], 0  ;;  %s247_s27 = smov [#allocation2]   ;;  %s39_s8 = sshll.u32 %s365_s5, 4  ;;  %s40_s8 = int_to_ptr.hbm [resolvable:$true] %s39_s8 }
   0x3   :  { %s26_s28 = sshll.u32 %s247_s27, 4  ;;  %s248_s9 = smov 128   ;;  %s27_s28 = int_to_ptr.vmem [resolvable:$true] %s26_s28 }
   0x4   :  { %s249_s10 = smov 8   ;;  %s250_s11 = smov [#allocation4]  }
   0x5   :  { %32 = dma.hbm_to_vmem [thread:$0]  %s25_s26, 2048, %s27_s28, [#allocation3], %s248_s9, %s248_s9, %s249_s10  }
   0x6   :  { %s41_s12 = sshll.u32 %s250_s11, 4  ;;  %s42_s12 = int_to_ptr.vmem [resolvable:$true] %s41_s12 }
   0x7   :  { %47 = dma.hbm_to_vmem [thread:$0]  %s40_s8, 2048, %s42_s12, [#allocation5], %s248_s9, %s248_s9, %s249_s10  }
   0x8   :  { %243 = dma.done.wait [#allocation3], 2048  }
   0x9   :  { %244 = vsyncadd [#allocation3], 4294965248 }
   0xa   :  { %245 = dma.done.wait [#allocation5], 2048  }
   0xb   :  { %246 = vsyncadd [#allocation5], 4294965248  ;;  %v74_v0 = vld [vmem:[%s361_s1 + $0x78] sm:$0xff]  ;;  %v73_v1 = vld [vmem:[%s361_s1 + $0x70] sm:$0xff] }
   0xc   :  { %79 = vmatpush.msra.mxu0 %v74_v0  ;;  %v72_v2 = vld [vmem:[%s361_s1 + $0x68] sm:$0xff]  ;;  %v71_v3 = vld [vmem:[%s361_s1 + $0x60] sm:$0xff]  ;;  %v115_v4 = vld [vmem:[#allocation2 + $0x78] sm:$0xff] }
   0xd   :  { %v70_v5 = vld [vmem:[%s361_s1 + $0x58] sm:$0xff]  ;;  %120 = vmatpush.msra.mxu1 %v115_v4  ;;  %v114_v6 = vld [vmem:[#allocation2 + $0x70] sm:$0xff]  ;;  %v113_v7 = vld [vmem:[#allocation2 + $0x68] sm:$0xff] }
   0xe   :  { %80 = vmatpush.msra.mxu0 %v73_v1  ;;  %v69_v8 = vld [vmem:[%s361_s1 + $0x50] sm:$0xff]  ;;  %v112_v9 = vld [vmem:[#allocation2 + $0x60] sm:$0xff]  ;;  %v68_v10 = vld [vmem:[%s361_s1 + $0x48] sm:$0xff] }
   0xf   :  { %121 = vmatpush.msra.mxu1 %v114_v6  ;;  %v111_v11 = vld [vmem:[#allocation2 + $0x58] sm:$0xff]  ;;  %v67_v12 = vld [vmem:[%s361_s1 + $0x40] sm:$0xff]  ;;  %v110_v13 = vld [vmem:[#allocation2 + $0x50] sm:$0xff] }
  0x10   :  { %81 = vmatpush.msra.mxu0 %v72_v2  ;;  %v66_v14 = vld [vmem:[%s361_s1 + $0x38] sm:$0xff]  ;;  %v109_v15 = vld [vmem:[#allocation2 + $0x48] sm:$0xff]  ;;  %v65_v16 = vld [vmem:[%s361_s1 + $0x30] sm:$0xff] }
  0x11   :  { %122 = vmatpush.msra.mxu1 %v113_v7  ;;  %v108_v17 = vld [vmem:[#allocation2 + $0x40] sm:$0xff]  ;;  %v64_v18 = vld [vmem:[%s361_s1 + $0x28] sm:$0xff]  ;;  %v107_v19 = vld [vmem:[#allocation2 + $0x38] sm:$0xff] }
  0x12   :  { %82 = vmatpush.msra.mxu0 %v71_v3  ;;  %v63_v20 = vld [vmem:[%s361_s1 + $0x20] sm:$0xff]  ;;  %v106_v21 = vld [vmem:[#allocation2 + $0x30] sm:$0xff]  ;;  %v62_v22 = vld [vmem:[%s361_s1 + $0x18] sm:$0xff] }
  0x13   :  { %123 = vmatpush.msra.mxu1 %v112_v9  ;;  %v105_v23 = vld [vmem:[#allocation2 + $0x28] sm:$0xff]  ;;  %v61_v24 = vld [vmem:[%s361_s1 + $0x10] sm:$0xff]  ;;  %v104_v25 = vld [vmem:[#allocation2 + $0x20] sm:$0xff] }
  0x14   :  { %83 = vmatpush.msra.mxu0 %v70_v5  ;;  %v60_v26 = vld [vmem:[%s361_s1 + $0x8] sm:$0xff]  ;;  %v103_v27 = vld [vmem:[#allocation2 + $0x18] sm:$0xff]  ;;  %v59_v28 = vld [vmem:[%s361_s1] sm:$0xff] }
  0x15   :  { %124 = vmatpush.msra.mxu1 %v111_v11  ;;  %v58_v29 = vld [vmem:[%s360_s0] sm:$0xff]  ;;  %v102_v30 = vld [vmem:[#allocation2 + $0x10] sm:$0xff]  ;;  %v101_v31 = vld [vmem:[#allocation2 + $0x8] sm:$0xff] }
  0x16   :  { %84 = vmatpush.msra.mxu0 %v69_v8  ;;  %v100_v32 = vld [vmem:[#allocation2] sm:$0xff]  ;;  %v156_v33 = vld [vmem:[#allocation4 + $0x78] sm:$0xff]  ;;  %v155_v34 = vld [vmem:[#allocation4 + $0x70] sm:$0xff] }
  0x17   :  { %125 = vmatpush.msra.mxu1 %v110_v13  ;;  %161 = vmatpush.msra.mxu2 %v156_v33  ;;  %v154_v35 = vld [vmem:[#allocation4 + $0x68] sm:$0xff]  ;;  %v153_v36 = vld [vmem:[#allocation4 + $0x60] sm:$0xff]  ;;  %v152_v37 = vld [vmem:[#allocation4 + $0x58] sm:$0xff] }
  0x18   :  { %85 = vmatpush.msra.mxu0 %v68_v10  ;;  %v151_v38 = vld [vmem:[#allocation4 + $0x50] sm:$0xff]  ;;  %v150_v39 = vld [vmem:[#allocation4 + $0x48] sm:$0xff]  ;;  %v149_v40 = vld [vmem:[#allocation4 + $0x40] sm:$0xff] }
  0x19   :  { %126 = vmatpush.msra.mxu1 %v109_v15  ;;  %162 = vmatpush.msra.mxu2 %v155_v34  ;;  %v148_v41 = vld [vmem:[#allocation4 + $0x38] sm:$0xff]  ;;  %v147_v42 = vld [vmem:[#allocation4 + $0x30] sm:$0xff]  ;;  %v146_v43 = vld [vmem:[#allocation4 + $0x28] sm:$0xff] }
  0x1a   :  { %86 = vmatpush.msra.mxu0 %v67_v12  ;;  %v145_v44 = vld [vmem:[#allocation4 + $0x20] sm:$0xff]  ;;  %v144_v45 = vld [vmem:[#allocation4 + $0x18] sm:$0xff]  ;;  %v143_v50 = vld [vmem:[#allocation4 + $0x10] sm:$0xff] }
  0x1b   :  { %127 = vmatpush.msra.mxu1 %v108_v17  ;;  %163 = vmatpush.msra.mxu2 %v154_v35  ;;  %v192_v46 = vld [vmem:[%s362_s2] ss:$0 sm:$0xff]  ;;  %v142_v51 = vld [vmem:[#allocation4 + $0x8] sm:$0xff] }
  0x1c   :  { %87 = vmatpush.msra.mxu0 %v66_v14  ;;  %v141_v52 = vld [vmem:[#allocation4] sm:$0xff] }
  0x1d   :  { %128 = vmatpush.msra.mxu1 %v107_v19  ;;  %164 = vmatpush.msra.mxu2 %v153_v36  ;;  %v193_v53 = vld [vmem:[%s364_s4] ss:$0 sm:$0xff] }
  0x1e   :  { %88 = vmatpush.msra.mxu0 %v65_v16  ;;  %v194_v57 = vld [vmem:[%s366_s6] ss:$0 sm:$0xff] }
  0x1f   :  { %129 = vmatpush.msra.mxu1 %v106_v21  ;;  %165 = vmatpush.msra.mxu2 %v152_v37 }
  0x20   :  { %89 = vmatpush.msra.mxu0 %v64_v18 }
  0x21   :  { %130 = vmatpush.msra.mxu1 %v105_v23  ;;  %166 = vmatpush.msra.mxu2 %v151_v38 }
  0x22   :  { %90 = vmatpush.msra.mxu0 %v63_v20 }
  0x23   :  { %131 = vmatpush.msra.mxu1 %v104_v25  ;;  %167 = vmatpush.msra.mxu2 %v150_v39 }
  0x24   :  { %91 = vmatpush.msra.mxu0 %v62_v22 }
  0x25   :  { %132 = vmatpush.msra.mxu1 %v103_v27  ;;  %168 = vmatpush.msra.mxu2 %v149_v40 }
  0x26   :  { %92 = vmatpush.msra.mxu0 %v61_v24 }
  0x27   :  { %133 = vmatpush.msra.mxu1 %v102_v30  ;;  %169 = vmatpush.msra.mxu2 %v148_v41 }
  0x28   :  { %93 = vmatpush.msra.mxu0 %v60_v26 }
  0x29   :  { %134 = vmatpush.msra.mxu1 %v101_v31  ;;  %170 = vmatpush.msra.mxu2 %v147_v42 }
  0x2a   :  { %94 = vmatpush.msra.mxu0 %v59_v28 }
  0x2b   :  { %95 = vmatmul.f32.vlgmr.msra.gmra.mxu0 %v58_v29  ;;  %135 = vmatpush.msra.mxu1 %v100_v32 }
  0x2c   :  { %171 = vmatpush.msra.mxu2 %v146_v43 }
  0x2e   :  { %172 = vmatpush.msra.mxu2 %v145_v44 }
  0x30   :  { %173 = vmatpush.msra.mxu2 %v144_v45 }
  0x32   :  { %174 = vmatpush.msra.mxu2 %v143_v50 }
  0x34   :  { %175 = vmatpush.msra.mxu2 %v142_v51 }
  0x36   :  { %176 = vmatpush.msra.mxu2 %v141_v52 }
  0xa8   :  { %v96_v47 = vpop.f32.mrf.mxu0 }
  0xa9   :  { %v97_v48 = vadd.f32 %v192_v46, %v96_v47 }
  0xab   :  { %v99_v49 = vmax.f32 %v97_v48, 0.0 }
  0xad   :  { %136 = vmatmul.f32.vlgmr.msra.gmra.mxu1 %v99_v49 }
 0x12a   :  { %v137_v54 = vpop.f32.mrf.mxu1 }
 0x12b   :  { %v138_v55 = vadd.f32 %v193_v53, %v137_v54 }
 0x12d   :  { %v140_v56 = vmax.f32 %v138_v55, 0.0 }
 0x12f   :  { %177 = vmatmul.f32.vlgmr.msra.gmra.mxu2 %v140_v56 }
 0x1b2   :  { %v178_v58 = vpop.f32.mrf.mxu2 }
 0x1b3   :  { %v179_v59 = vadd.f32 %v194_v57, %v178_v58 }
 0x1b5   :  { %181 = vst [vmem:[%s367_s7] sm:$0xff] %v179_v59 }
 0x1b6   :  { %186 = vsyncpa [#allocation3], 1 }
 0x1b7   :  { %187 = vsyncpa [#allocation5], 1 }

</bundles_post_ra>
